<compile_context>
chip_gen: v7x
topology: tpu7x:2x2x1
jax: 0.10.0
libtpu: 0.0.40
codegen_flags: <defaults>
</compile_context>

<pallas_src>
import math

import jax
import jax.numpy as jnp
from jax.experimental import pallas as pl
from jax.experimental.pallas import tpu as pltpu

# ------------------------- problem sizes (small, synthetic) -------------------------
N = 16             # number of graph nodes (multiple of 16 -> bf16 tile-aligned row blocks)
E = 32             # number of edges
INPUT_SIZE = 8     # node feature dim
HIDDEN = 32        # hidden_channels (TransformerConv out, heads=1, concat=True)
OUT_CHANNELS = 4   # decoder output dim
EDGE_DIM = 4       # edge_attr feature dim
HIDDEN_GRU = 64    # GRUDecoder hidden size
DATA_COLS = 16     # common lane width of the packed data slab (>= INPUT_SIZE, EDGE_DIM, N)

# ----- data slab row offsets (bf16 [80, 16]; all offsets multiples of 16) -----
_D_X = 0                  # 16 rows: x, cols INPUT_SIZE..16 zero
_D_SRC = 16               # 32 rows: one-hot source-gather matrix  [E, N]
_D_EA = 48                # 32 rows: edge_attr, cols EDGE_DIM..16 zero
_D_ROWS = 80

# ----- weight slab row offsets (bf16 [512, 128]; all offsets multiples of 16) -----
_W_C1 = 0                 # 16 rows: conv1 fused  [wq*s | wk | wv | wskip]   (rows 8..16 zero)
_W_EDGE = 16              # 16 rows: lin_edge     [we1 | we2 | 0]            (rows 4..16 zero)
_W_C2 = 32                # 32 rows: conv2 fused  [wq*s | wk | wv | wskip]
_W_MLP1 = 64              # 64 rows:  MLP 64 -> 128
_W_MLP2 = 128             # 128 rows: MLP 128 -> 64   (cols 64..128 zero)
_W_MLP3 = 256             # 128 rows: MLP 64 -> 32    (rows 64..128 zero, cols 32..128 zero)
_W_MLP4 = 384             # 128 rows: MLP 32 -> out   (rows 32..128 zero, cols 4..128 zero)
_W_ROWS = 512

# ----- bias slab rows (f32 [16, 128]; one bias group per row, lane offset always 0) -----
_BR_CONV1 = 0             # fused q|k|v|skip bias, conv layer 1 (q part pre-scaled)
_BR_CONV2 = 1             # fused q|k|v|skip bias, conv layer 2 (q part pre-scaled)
_BR_GRU_R = 2             # b_ir + b_hr   (lanes 0..64)
_BR_GRU_Z = 3             # b_iz + b_hz   (lanes 0..64)
_BR_GRU_N = 4             # b_in          (lanes 0..64)
_BR_GRU_HN = 5            # b_hn          (lanes 0..64)
_BR_MLP1 = 6              # 128
_BR_MLP2 = 7              # 64
_BR_MLP3 = 8              # 32
_BR_MLP4 = 9              # 4
_B_ROWS = 16


# ------------------------- in-kernel building blocks -------------------------
def _transformer_conv(x_bf, e_edge, ssrc_bf, mask_b, mask_f, w_fused, b_fused):
    """PyG TransformerConv, heads=1, concat=True, root_weight=True, beta=False.

    w_fused = [wq*scale | wk | wv | wskip] ([cin, 128] bf16), b_fused matching [1, 128] f32
    (q bias pre-scaled).  e_edge = lin_edge(edge_attr) ([E, HIDDEN] f32, no bias).
    """
    proj = jnp.dot(x_bf, w_fused, preferred_element_type=jnp.float32) + b_fused  # [N,128]=q|k|v|s
    q = proj[:, 0:HIDDEN]                                                   # [N, C]  (pre-scaled)
    kv = proj[:, HIDDEN:3 * HIDDEN]                                         # [N, 2C] = k|v
    skip = proj[:, 3 * HIDDEN:4 * HIDDEN]                                   # [N, C]  lin_skip(x)+b

    # single gather matmul for k and v, then add the edge projection to both halves
    kvj = jnp.dot(ssrc_bf, kv.astype(jnp.bfloat16),
                  preferred_element_type=jnp.float32)                       # [E, 2C]
    kj = kvj[:, 0:HIDDEN] + e_edge                                          # key_j   + edge
    vj = kvj[:, HIDDEN:2 * HIDDEN] + e_edge                                 # value_j + edge

    # score[i, e] = (q_i . kj_e) / sqrt(C)  (scale folded into q).  E stays on the lane axis
    # so the softmax reduction is lane-wise.
    s = jax.lax.dot_general(q.astype(jnp.bfloat16), kj.astype(jnp.bfloat16),
                            (((1,), (1,)), ((), ())),
                            preferred_element_type=jnp.float32)             # [N, E]
    logits = jnp.where(mask_b, s, -1e30)
    m = jnp.max(logits, axis=-1, keepdims=True)
    p = jnp.exp(logits - m) * mask_f                                        # keeps no-edge rows 0
    denom = jnp.sum(p, axis=-1, keepdims=True)
    attn = p * pl.reciprocal(jnp.maximum(denom, 1e-30), approx=True)

    agg = jnp.dot(attn.astype(jnp.bfloat16), vj.astype(jnp.bfloat16),
                  preferred_element_type=jnp.float32)                       # [N, C]
    return agg + skip


def gnn_kernel(data_ref, sdstT_ref, w_ref, wgru_ref, b_ref, out_ref):
    # tile-aligned row slices of the packed bf16 data slab
    x = data_ref[_D_X:_D_X + N, :]                 # [N, 16] bf16 (cols 8..16 zero)
    ssrc = data_ref[_D_SRC:_D_SRC + E, :]          # [E, N]  bf16 one-hot
    ea = data_ref[_D_EA:_D_EA + E, :]              # [E, 16] bf16 (cols 4..16 zero)

    sdstT = sdstT_ref[...]                         # [N, E] f32 one-hot (dest mask)
    mask_b = sdstT > 0.5
    mask_f = sdstT

    # both layers' edge projections in one matmul (lin_edge has no bias)
    e_both = jnp.dot(ea, w_ref[_W_EDGE:_W_EDGE + 16, :],
                     preferred_element_type=jnp.float32)                    # [E, 128]
    e1 = e_both[:, 0:HIDDEN]
    e2 = e_both[:, HIDDEN:2 * HIDDEN]

    # encoder: TransformerConv -> ReLU -> TransformerConv
    h = _transformer_conv(x, e1, ssrc, mask_b, mask_f,
                          w_ref[_W_C1:_W_C1 + 16, :],
                          b_ref[_BR_CONV1:_BR_CONV1 + 1, :])
    h = jnp.maximum(h, 0.0).astype(jnp.bfloat16)
    h = _transformer_conv(h, e2, ssrc, mask_b, mask_f,
                          w_ref[_W_C2:_W_C2 + HIDDEN, :],
                          b_ref[_BR_CONV2:_BR_CONV2 + 1, :])

    # GRUDecoder: nn.GRU(batch_first=True) over a length-1 sequence with h0 = 0, so
    #   r = sigmoid(Wir h + b_ir + b_hr), z = sigmoid(Wiz h + b_iz + b_hz)
    #   n = tanh(Win h + b_in + r * b_hn), h1 = (1 - z) * n
    # Gates packed at lane offsets 0 / 128 / 256 in one [32, 384] weight -> aligned slices.
    g_pre = jnp.dot(h.astype(jnp.bfloat16), wgru_ref[...],
                    preferred_element_type=jnp.float32)                     # [N, 384]
    b_r = b_ref[_BR_GRU_R:_BR_GRU_R + 1, 0:HIDDEN_GRU]
    b_z = b_ref[_BR_GRU_Z:_BR_GRU_Z + 1, 0:HIDDEN_GRU]
    b_n = b_ref[_BR_GRU_N:_BR_GRU_N + 1, 0:HIDDEN_GRU]
    b_hn = b_ref[_BR_GRU_HN:_BR_GRU_HN + 1, 0:HIDDEN_GRU]
    r = jax.nn.sigmoid(g_pre[:, 0:HIDDEN_GRU] + b_r)
    z = jax.nn.sigmoid(g_pre[:, 128:128 + HIDDEN_GRU] + b_z)
    n = jnp.tanh(g_pre[:, 256:256 + HIDDEN_GRU] + b_n + r * b_hn)
    g = ((1.0 - z) * n).astype(jnp.bfloat16)                                # [N, HIDDEN_GRU]

    # MLP head: 64 -> 128 -> 64 -> 32 -> out_channels, kept lane-dense (padded to 128 lanes).
    m1 = jnp.maximum(
        jnp.dot(g, w_ref[_W_MLP1:_W_MLP1 + 64, :], preferred_element_type=jnp.float32)
        + b_ref[_BR_MLP1:_BR_MLP1 + 1, :], 0.0)
    m2 = jnp.maximum(
        jnp.dot(m1.astype(jnp.bfloat16), w_ref[_W_MLP2:_W_MLP2 + 128, :],
                preferred_element_type=jnp.float32)
        + b_ref[_BR_MLP2:_BR_MLP2 + 1, :], 0.0)
    m3 = jnp.maximum(
        jnp.dot(m2.astype(jnp.bfloat16), w_ref[_W_MLP3:_W_MLP3 + 128, :],
                preferred_element_type=jnp.float32)
        + b_ref[_BR_MLP3:_BR_MLP3 + 1, :], 0.0)
    # lane-dense [N, 128] store; wrapper slices [:, :OUT_CHANNELS]
    out_ref[...] = (jnp.dot(m3.astype(jnp.bfloat16), w_ref[_W_MLP4:_W_MLP4 + 128, :],
                            preferred_element_type=jnp.float32)
                    + b_ref[_BR_MLP4:_BR_MLP4 + 1, :])


# ------------------------- plain-JAX glue: parameter packing -------------------------
def init_params(key):
    keys = iter(jax.random.split(key, 64))

    def w_(i, o):
        return jax.random.normal(next(keys), (i, o), jnp.float32) * (1.0 / math.sqrt(i))

    def b_(o):
        return jax.random.normal(next(keys), (1, o), jnp.float32) * 0.01

    scale = 1.0 / math.sqrt(HIDDEN)

    # two TransformerConv layers: q|k|v|skip fused; 1/sqrt(C) folded into wq and bq;
    # lin_edge has no bias (matches PyG TransformerConv)
    conv_w, conv_b, edge_w = [], [], []
    for cin in (INPUT_SIZE, HIDDEN):
        wq, bq = w_(cin, HIDDEN), b_(HIDDEN)
        wk, bk = w_(cin, HIDDEN), b_(HIDDEN)
        wv, bv = w_(cin, HIDDEN), b_(HIDDEN)
        we = w_(EDGE_DIM, HIDDEN)
        ws, bs = w_(cin, HIDDEN), b_(HIDDEN)
        conv_w.append(jnp.concatenate([wq * scale, wk, wv, ws], axis=1))   # [cin, 128]
        conv_b.append(jnp.concatenate([bq * scale, bk, bv, bs], axis=1))   # [1, 128]
        edge_w.append(we)

    # MLP(64, [128, 64, 32], out_channels)
    mw1, mb1 = w_(HIDDEN_GRU, 128), b_(128)
    mw2, mb2 = w_(128, 64), b_(64)
    mw3, mb3 = w_(64, 32), b_(32)
    mw4, mb4 = w_(32, OUT_CHANNELS), b_(OUT_CHANNELS)

    # merged, tile-aligned, 128-lane-wide weight slab
    wslab = jnp.zeros((_W_ROWS, 128), jnp.float32)
    wslab = wslab.at[_W_C1:_W_C1 + INPUT_SIZE, :].set(conv_w[0])
    wslab = wslab.at[_W_EDGE:_W_EDGE + EDGE_DIM, 0:HIDDEN].set(edge_w[0])
    wslab = wslab.at[_W_EDGE:_W_EDGE + EDGE_DIM, HIDDEN:2 * HIDDEN].set(edge_w[1])
    wslab = wslab.at[_W_C2:_W_C2 + HIDDEN, :].set(conv_w[1])
    wslab = wslab.at[_W_MLP1:_W_MLP1 + 64, :].set(mw1)
    wslab = wslab.at[_W_MLP2:_W_MLP2 + 128, 0:64].set(mw2)
    wslab = wslab.at[_W_MLP3:_W_MLP3 + 64, 0:32].set(mw3)
    wslab = wslab.at[_W_MLP4:_W_MLP4 + 32, 0:OUT_CHANNELS].set(mw4)

    # GRU (single step, h0 = 0: weight_hh never touches data; only its biases survive).
    # Gates at lane offsets 0 / 128 / 256 so the in-kernel gate slices are 128-aligned.
    wir, wiz, win = w_(HIDDEN, HIDDEN_GRU), w_(HIDDEN, HIDDEN_GRU), w_(HIDDEN, HIDDEN_GRU)
    b_ir, b_iz, b_in = b_(HIDDEN_GRU), b_(HIDDEN_GRU), b_(HIDDEN_GRU)
    b_hr, b_hz, b_hn = b_(HIDDEN_GRU), b_(HIDDEN_GRU), b_(HIDDEN_GRU)
    w_gru = jnp.zeros((HIDDEN, 384), jnp.float32)
    w_gru = w_gru.at[:, 0:HIDDEN_GRU].set(wir)
    w_gru = w_gru.at[:, 128:128 + HIDDEN_GRU].set(wiz)
    w_gru = w_gru.at[:, 256:256 + HIDDEN_GRU].set(win)

    # 2-D bias slab: one bias group per row, lane offset always 0 (no unaligned lane slices)
    bias = jnp.zeros((_B_ROWS, 128), jnp.float32)
    bias = bias.at[_BR_CONV1, :].set(conv_b[0][0])
    bias = bias.at[_BR_CONV2, :].set(conv_b[1][0])
    bias = bias.at[_BR_GRU_R, 0:HIDDEN_GRU].set((b_ir + b_hr)[0])
    bias = bias.at[_BR_GRU_Z, 0:HIDDEN_GRU].set((b_iz + b_hz)[0])
    bias = bias.at[_BR_GRU_N, 0:HIDDEN_GRU].set(b_in[0])
    bias = bias.at[_BR_GRU_HN, 0:HIDDEN_GRU].set(b_hn[0])
    bias = bias.at[_BR_MLP1, :].set(mb1[0])
    bias = bias.at[_BR_MLP2, 0:64].set(mb2[0])
    bias = bias.at[_BR_MLP3, 0:32].set(mb3[0])
    bias = bias.at[_BR_MLP4, 0:OUT_CHANNELS].set(mb4[0])

    # weights travel as bf16 (halved DMA bytes, MXU bf16 inputs); biases stay f32
    return dict(
        wslab=wslab.astype(jnp.bfloat16),
        wgru=w_gru.astype(jnp.bfloat16),
        bias=bias,
    )


# ------------------------- plain-JAX glue: forward -------------------------
@jax.jit
def gnn_forward(x, edge_index, edge_attr, params):
    # densify the graph structure and pack the small bf16 inputs into ONE slab (glue, not hot path)
    ssrc = jax.nn.one_hot(edge_index[0], N, dtype=jnp.bfloat16)            # [E, N]
    sdstT = jax.nn.one_hot(edge_index[1], N, dtype=jnp.float32).T          # [N, E]
    x_pad = jnp.zeros((N, DATA_COLS), jnp.bfloat16)
    x_pad = x_pad.at[:, :INPUT_SIZE].set(x.astype(jnp.bfloat16))
    ea_pad = jnp.zeros((E, DATA_COLS), jnp.bfloat16)
    ea_pad = ea_pad.at[:, :EDGE_DIM].set(edge_attr.astype(jnp.bfloat16))
    data = jnp.concatenate([x_pad, ssrc, ea_pad], axis=0)                  # [80, 16] bf16

    vmem = pl.BlockSpec(memory_space=pltpu.MemorySpace.VMEM)
    out = pl.pallas_call(
        gnn_kernel,
        out_shape=jax.ShapeDtypeStruct((N, 128), jnp.float32),             # lane-dense store
        in_specs=[vmem] * 5,
        out_specs=vmem,
    )(data, sdstT, params["wslab"], params["wgru"], params["bias"])
    return out[:, :OUT_CHANNELS]


if __name__ == "__main__":
    key = jax.random.PRNGKey(0)
    kx, ke, ks, kd, kp = jax.random.split(key, 5)

    x = jax.random.normal(kx, (N, INPUT_SIZE), jnp.float32)
    edge_attr = jax.random.normal(ke, (E, EDGE_DIM), jnp.float32)
    src = jax.random.randint(ks, (E,), 0, N)
    dst = jax.random.randint(kd, (E,), 0, N)
    edge_index = jnp.stack([src, dst], axis=0)                             # [2, E]

    params = init_params(kp)

    out = gnn_forward(x, edge_index, edge_attr, params)
    jax.block_until_ready(out)
    assert out.shape == (N, OUT_CHANNELS)
    print("KERNEL_OK")
</pallas_src>

<mosaic_0001>
module attributes {stable_mosaic.version = 11 : i64} {
  func.func @gnn_kernel(%arg0: memref<80x16xbf16, #tpu.memory_space<vmem>>, %arg1: memref<16x32xf32, #tpu.memory_space<vmem>>, %arg2: memref<512x128xbf16, #tpu.memory_space<vmem>>, %arg3: memref<32x384xbf16, #tpu.memory_space<vmem>>, %arg4: memref<16x128xf32, #tpu.memory_space<vmem>>, %arg5: memref<16x128xf32, #tpu.memory_space<vmem>>) attributes {dimension_semantics = [], scalar_prefetch = 0 : i64, scratch_operands = 0 : i64, tpu.core_type = #tpu.core_type<tc>} {
    %c0 = arith.constant 0 : index
    %c0_0 = arith.constant 0 : index
    %0 = vector.load %arg0[%c0, %c0_0] : memref<80x16xbf16, #tpu.memory_space<vmem>>, vector<16x16xbf16>
    %c16 = arith.constant 16 : index
    %c0_1 = arith.constant 0 : index
    %1 = vector.load %arg0[%c16, %c0_1] : memref<80x16xbf16, #tpu.memory_space<vmem>>, vector<32x16xbf16>
    %c48 = arith.constant 48 : index
    %c0_2 = arith.constant 0 : index
    %2 = vector.load %arg0[%c48, %c0_2] : memref<80x16xbf16, #tpu.memory_space<vmem>>, vector<32x16xbf16>
    %c0_3 = arith.constant 0 : index
    %c0_4 = arith.constant 0 : index
    %3 = vector.load %arg1[%c0_3, %c0_4] : memref<16x32xf32, #tpu.memory_space<vmem>>, vector<16x32xf32>
    %cst = arith.constant 5.000000e-01 : f32
    %4 = vector.broadcast %cst : f32 to vector<16x32xf32>
    %5 = arith.cmpf ogt, %3, %4 : vector<16x32xf32>
    %c16_5 = arith.constant 16 : index
    %c0_6 = arith.constant 0 : index
    %6 = vector.load %arg2[%c16_5, %c0_6] : memref<512x128xbf16, #tpu.memory_space<vmem>>, vector<16x128xbf16>
    %cst_7 = arith.constant dense<0.000000e+00> : vector<32x128xf32>
    %7 = tpu.matmul %2, %6, %cst_7 {dimension_numbers = #tpu.dot_dimension_numbers<[1], [0], [0], [1], [0, 0, 1, 1], [], []>} : vector<32x16xbf16>, vector<16x128xbf16>, vector<32x128xf32> -> vector<32x128xf32>
    %8 = vector.extract_strided_slice %7 {offsets = [0, 0], sizes = [32, 32], strides = [1, 1]} : vector<32x128xf32> to vector<32x32xf32>
    %9 = vector.extract_strided_slice %7 {offsets = [0, 32], sizes = [32, 32], strides = [1, 1]} : vector<32x128xf32> to vector<32x32xf32>
    %c0_8 = arith.constant 0 : index
    %c0_9 = arith.constant 0 : index
    %10 = vector.load %arg2[%c0_8, %c0_9] : memref<512x128xbf16, #tpu.memory_space<vmem>>, vector<16x128xbf16>
    %c0_10 = arith.constant 0 : index
    %c0_11 = arith.constant 0 : index
    %11 = vector.load %arg4[%c0_10, %c0_11] : memref<16x128xf32, #tpu.memory_space<vmem>>, vector<1x128xf32>
    %cst_12 = arith.constant dense<0.000000e+00> : vector<16x128xf32>
    %12 = tpu.matmul %0, %10, %cst_12 {dimension_numbers = #tpu.dot_dimension_numbers<[1], [0], [0], [1], [0, 0, 1, 1], [], []>} : vector<16x16xbf16>, vector<16x128xbf16>, vector<16x128xf32> -> vector<16x128xf32>
    %13 = vector.broadcast %11 : vector<1x128xf32> to vector<16x128xf32>
    %14 = arith.addf %12, %13 : vector<16x128xf32>
    %15 = vector.extract_strided_slice %14 {offsets = [0, 0], sizes = [16, 32], strides = [1, 1]} : vector<16x128xf32> to vector<16x32xf32>
    %16 = vector.extract_strided_slice %14 {offsets = [0, 32], sizes = [16, 64], strides = [1, 1]} : vector<16x128xf32> to vector<16x64xf32>
    %17 = vector.extract_strided_slice %14 {offsets = [0, 96], sizes = [16, 32], strides = [1, 1]} : vector<16x128xf32> to vector<16x32xf32>
    %18 = arith.truncf %16 : vector<16x64xf32> to vector<16x64xbf16>
    %cst_13 = arith.constant dense<0.000000e+00> : vector<32x64xf32>
    %19 = tpu.matmul %1, %18, %cst_13 {dimension_numbers = #tpu.dot_dimension_numbers<[1], [0], [0], [1], [0, 0, 1, 1], [], []>} : vector<32x16xbf16>, vector<16x64xbf16>, vector<32x64xf32> -> vector<32x64xf32>
    %20 = vector.extract_strided_slice %19 {offsets = [0, 0], sizes = [32, 32], strides = [1, 1]} : vector<32x64xf32> to vector<32x32xf32>
    %21 = arith.addf %20, %8 : vector<32x32xf32>
    %22 = vector.extract_strided_slice %19 {offsets = [0, 32], sizes = [32, 32], strides = [1, 1]} : vector<32x64xf32> to vector<32x32xf32>
    %23 = arith.addf %22, %8 : vector<32x32xf32>
    %24 = arith.truncf %15 : vector<16x32xf32> to vector<16x32xbf16>
    %25 = arith.truncf %21 : vector<32x32xf32> to vector<32x32xbf16>
    %cst_14 = arith.constant dense<0.000000e+00> : vector<16x32xf32>
    %26 = tpu.matmul %24, %25, %cst_14 {dimension_numbers = #tpu.dot_dimension_numbers<[1], [1], [0], [0], [0, 0, 1, 0], [], []>} : vector<16x32xbf16>, vector<32x32xbf16>, vector<16x32xf32> -> vector<16x32xf32>
    %cst_15 = arith.constant -1.000000e+30 : f32
    %27 = vector.broadcast %cst_15 : f32 to vector<16x32xf32>
    %28 = arith.select %5, %26, %27 : vector<16x32xi1>, vector<16x32xf32>
    %cst_16 = arith.constant dense<0xFF800000> : vector<16xf32>
    %29 = vector.multi_reduction <maximumf>, %28, %cst_16 [1] : vector<16x32xf32> to vector<16xf32>
    %30 = vector.shape_cast %29 : vector<16xf32> to vector<16x1xf32>
    %31 = vector.broadcast %30 : vector<16x1xf32> to vector<16x32xf32>
    %32 = arith.subf %28, %31 : vector<16x32xf32>
    %33 = math.exp %32 : vector<16x32xf32>
    %34 = arith.mulf %33, %3 : vector<16x32xf32>
    %cst_17 = arith.constant dense<0.000000e+00> : vector<16xf32>
    %35 = vector.multi_reduction <add>, %34, %cst_17 [1] : vector<16x32xf32> to vector<16xf32>
    %36 = vector.shape_cast %35 : vector<16xf32> to vector<16x1xf32>
    %cst_18 = arith.constant 1.000000e-30 : f32
    %37 = vector.broadcast %cst_18 : f32 to vector<16x1xf32>
    %38 = arith.maximumf %36, %37 : vector<16x1xf32>
    %39 = tpu.reciprocal %38 {approx = true} : vector<16x1xf32> -> vector<16x1xf32>
    %40 = vector.broadcast %39 : vector<16x1xf32> to vector<16x32xf32>
    %41 = arith.mulf %34, %40 : vector<16x32xf32>
    %42 = arith.truncf %41 : vector<16x32xf32> to vector<16x32xbf16>
    %43 = arith.truncf %23 : vector<32x32xf32> to vector<32x32xbf16>
    %cst_19 = arith.constant dense<0.000000e+00> : vector<16x32xf32>
    %44 = tpu.matmul %42, %43, %cst_19 {dimension_numbers = #tpu.dot_dimension_numbers<[1], [0], [0], [1], [0, 0, 1, 1], [], []>} : vector<16x32xbf16>, vector<32x32xbf16>, vector<16x32xf32> -> vector<16x32xf32>
    %45 = arith.addf %44, %17 : vector<16x32xf32>
    %cst_20 = arith.constant 0.000000e+00 : f32
    %46 = vector.broadcast %cst_20 : f32 to vector<16x32xf32>
    %47 = arith.maximumf %45, %46 : vector<16x32xf32>
    %48 = arith.truncf %47 : vector<16x32xf32> to vector<16x32xbf16>
    %c32 = arith.constant 32 : index
    %c0_21 = arith.constant 0 : index
    %49 = vector.load %arg2[%c32, %c0_21] : memref<512x128xbf16, #tpu.memory_space<vmem>>, vector<32x128xbf16>
    %c1 = arith.constant 1 : index
    %c0_22 = arith.constant 0 : index
    %50 = vector.load %arg4[%c1, %c0_22] : memref<16x128xf32, #tpu.memory_space<vmem>>, vector<1x128xf32>
    %cst_23 = arith.constant dense<0.000000e+00> : vector<16x128xf32>
    %51 = tpu.matmul %48, %49, %cst_23 {dimension_numbers = #tpu.dot_dimension_numbers<[1], [0], [0], [1], [0, 0, 1, 1], [], []>} : vector<16x32xbf16>, vector<32x128xbf16>, vector<16x128xf32> -> vector<16x128xf32>
    %52 = vector.broadcast %50 : vector<1x128xf32> to vector<16x128xf32>
    %53 = arith.addf %51, %52 : vector<16x128xf32>
    %54 = vector.extract_strided_slice %53 {offsets = [0, 0], sizes = [16, 32], strides = [1, 1]} : vector<16x128xf32> to vector<16x32xf32>
    %55 = vector.extract_strided_slice %53 {offsets = [0, 32], sizes = [16, 64], strides = [1, 1]} : vector<16x128xf32> to vector<16x64xf32>
    %56 = vector.extract_strided_slice %53 {offsets = [0, 96], sizes = [16, 32], strides = [1, 1]} : vector<16x128xf32> to vector<16x32xf32>
    %57 = arith.truncf %55 : vector<16x64xf32> to vector<16x64xbf16>
    %cst_24 = arith.constant dense<0.000000e+00> : vector<32x64xf32>
    %58 = tpu.matmul %1, %57, %cst_24 {dimension_numbers = #tpu.dot_dimension_numbers<[1], [0], [0], [1], [0, 0, 1, 1], [], []>} : vector<32x16xbf16>, vector<16x64xbf16>, vector<32x64xf32> -> vector<32x64xf32>
    %59 = vector.extract_strided_slice %58 {offsets = [0, 0], sizes = [32, 32], strides = [1, 1]} : vector<32x64xf32> to vector<32x32xf32>
    %60 = arith.addf %59, %9 : vector<32x32xf32>
    %61 = vector.extract_strided_slice %58 {offsets = [0, 32], sizes = [32, 32], strides = [1, 1]} : vector<32x64xf32> to vector<32x32xf32>
    %62 = arith.addf %61, %9 : vector<32x32xf32>
    %63 = arith.truncf %54 : vector<16x32xf32> to vector<16x32xbf16>
    %64 = arith.truncf %60 : vector<32x32xf32> to vector<32x32xbf16>
    %cst_25 = arith.constant dense<0.000000e+00> : vector<16x32xf32>
    %65 = tpu.matmul %63, %64, %cst_25 {dimension_numbers = #tpu.dot_dimension_numbers<[1], [1], [0], [0], [0, 0, 1, 0], [], []>} : vector<16x32xbf16>, vector<32x32xbf16>, vector<16x32xf32> -> vector<16x32xf32>
    %cst_26 = arith.constant -1.000000e+30 : f32
    %66 = vector.broadcast %cst_26 : f32 to vector<16x32xf32>
    %67 = arith.select %5, %65, %66 : vector<16x32xi1>, vector<16x32xf32>
    %cst_27 = arith.constant dense<0xFF800000> : vector<16xf32>
    %68 = vector.multi_reduction <maximumf>, %67, %cst_27 [1] : vector<16x32xf32> to vector<16xf32>
    %69 = vector.shape_cast %68 : vector<16xf32> to vector<16x1xf32>
    %70 = vector.broadcast %69 : vector<16x1xf32> to vector<16x32xf32>
    %71 = arith.subf %67, %70 : vector<16x32xf32>
    %72 = math.exp %71 : vector<16x32xf32>
    %73 = arith.mulf %72, %3 : vector<16x32xf32>
    %cst_28 = arith.constant dense<0.000000e+00> : vector<16xf32>
    %74 = vector.multi_reduction <add>, %73, %cst_28 [1] : vector<16x32xf32> to vector<16xf32>
    %75 = vector.shape_cast %74 : vector<16xf32> to vector<16x1xf32>
    %cst_29 = arith.constant 1.000000e-30 : f32
    %76 = vector.broadcast %cst_29 : f32 to vector<16x1xf32>
    %77 = arith.maximumf %75, %76 : vector<16x1xf32>
    %78 = tpu.reciprocal %77 {approx = true} : vector<16x1xf32> -> vector<16x1xf32>
    %79 = vector.broadcast %78 : vector<16x1xf32> to vector<16x32xf32>
    %80 = arith.mulf %73, %79 : vector<16x32xf32>
    %81 = arith.truncf %80 : vector<16x32xf32> to vector<16x32xbf16>
    %82 = arith.truncf %62 : vector<32x32xf32> to vector<32x32xbf16>
    %cst_30 = arith.constant dense<0.000000e+00> : vector<16x32xf32>
    %83 = tpu.matmul %81, %82, %cst_30 {dimension_numbers = #tpu.dot_dimension_numbers<[1], [0], [0], [1], [0, 0, 1, 1], [], []>} : vector<16x32xbf16>, vector<32x32xbf16>, vector<16x32xf32> -> vector<16x32xf32>
    %84 = arith.addf %83, %56 : vector<16x32xf32>
    %85 = arith.truncf %84 : vector<16x32xf32> to vector<16x32xbf16>
    %c0_31 = arith.constant 0 : index
    %c0_32 = arith.constant 0 : index
    %86 = vector.load %arg3[%c0_31, %c0_32] : memref<32x384xbf16, #tpu.memory_space<vmem>>, vector<32x384xbf16>
    %cst_33 = arith.constant dense<0.000000e+00> : vector<16x384xf32>
    %87 = tpu.matmul %85, %86, %cst_33 {dimension_numbers = #tpu.dot_dimension_numbers<[1], [0], [0], [1], [0, 0, 1, 1], [], []>} : vector<16x32xbf16>, vector<32x384xbf16>, vector<16x384xf32> -> vector<16x384xf32>
    %c2 = arith.constant 2 : index
    %c0_34 = arith.constant 0 : index
    %88 = vector.load %arg4[%c2, %c0_34] : memref<16x128xf32, #tpu.memory_space<vmem>>, vector<1x64xf32>
    %c3 = arith.constant 3 : index
    %c0_35 = arith.constant 0 : index
    %89 = vector.load %arg4[%c3, %c0_35] : memref<16x128xf32, #tpu.memory_space<vmem>>, vector<1x64xf32>
    %c4 = arith.constant 4 : index
    %c0_36 = arith.constant 0 : index
    %90 = vector.load %arg4[%c4, %c0_36] : memref<16x128xf32, #tpu.memory_space<vmem>>, vector<1x64xf32>
    %c5 = arith.constant 5 : index
    %c0_37 = arith.constant 0 : index
    %91 = vector.load %arg4[%c5, %c0_37] : memref<16x128xf32, #tpu.memory_space<vmem>>, vector<1x64xf32>
    %92 = vector.extract_strided_slice %87 {offsets = [0, 0], sizes = [16, 64], strides = [1, 1]} : vector<16x384xf32> to vector<16x64xf32>
    %93 = vector.broadcast %88 : vector<1x64xf32> to vector<16x64xf32>
    %94 = arith.addf %92, %93 : vector<16x64xf32>
    %95 = arith.negf %94 : vector<16x64xf32>
    %96 = math.exp %95 : vector<16x64xf32>
    %cst_38 = arith.constant 1.000000e+00 : f32
    %97 = vector.broadcast %cst_38 : f32 to vector<16x64xf32>
    %98 = arith.addf %97, %96 : vector<16x64xf32>
    %99 = arith.divf %97, %98 : vector<16x64xf32>
    %100 = vector.extract_strided_slice %87 {offsets = [0, 128], sizes = [16, 64], strides = [1, 1]} : vector<16x384xf32> to vector<16x64xf32>
    %101 = vector.broadcast %89 : vector<1x64xf32> to vector<16x64xf32>
    %102 = arith.addf %100, %101 : vector<16x64xf32>
    %103 = arith.negf %102 : vector<16x64xf32>
    %104 = math.exp %103 : vector<16x64xf32>
    %cst_39 = arith.constant 1.000000e+00 : f32
    %105 = vector.broadcast %cst_39 : f32 to vector<16x64xf32>
    %106 = arith.addf %105, %104 : vector<16x64xf32>
    %107 = arith.divf %105, %106 : vector<16x64xf32>
    %108 = vector.extract_strided_slice %87 {offsets = [0, 256], sizes = [16, 64], strides = [1, 1]} : vector<16x384xf32> to vector<16x64xf32>
    %109 = vector.broadcast %90 : vector<1x64xf32> to vector<16x64xf32>
    %110 = arith.addf %108, %109 : vector<16x64xf32>
    %111 = vector.broadcast %91 : vector<1x64xf32> to vector<16x64xf32>
    %112 = arith.mulf %99, %111 : vector<16x64xf32>
    %113 = arith.addf %110, %112 : vector<16x64xf32>
    %114 = math.tanh %113 : vector<16x64xf32>
    %cst_40 = arith.constant 1.000000e+00 : f32
    %115 = vector.broadcast %cst_40 : f32 to vector<16x64xf32>
    %116 = arith.subf %115, %107 : vector<16x64xf32>
    %117 = arith.mulf %116, %114 : vector<16x64xf32>
    %118 = arith.truncf %117 : vector<16x64xf32> to vector<16x64xbf16>
    %c64 = arith.constant 64 : index
    %c0_41 = arith.constant 0 : index
    %119 = vector.load %arg2[%c64, %c0_41] : memref<512x128xbf16, #tpu.memory_space<vmem>>, vector<64x128xbf16>
    %cst_42 = arith.constant dense<0.000000e+00> : vector<16x128xf32>
    %120 = tpu.matmul %118, %119, %cst_42 {dimension_numbers = #tpu.dot_dimension_numbers<[1], [0], [0], [1], [0, 0, 1, 1], [], []>} : vector<16x64xbf16>, vector<64x128xbf16>, vector<16x128xf32> -> vector<16x128xf32>
    %c6 = arith.constant 6 : index
    %c0_43 = arith.constant 0 : index
    %121 = vector.load %arg4[%c6, %c0_43] : memref<16x128xf32, #tpu.memory_space<vmem>>, vector<1x128xf32>
    %122 = vector.broadcast %121 : vector<1x128xf32> to vector<16x128xf32>
    %123 = arith.addf %120, %122 : vector<16x128xf32>
    %cst_44 = arith.constant 0.000000e+00 : f32
    %124 = vector.broadcast %cst_44 : f32 to vector<16x128xf32>
    %125 = arith.maximumf %123, %124 : vector<16x128xf32>
    %126 = arith.truncf %125 : vector<16x128xf32> to vector<16x128xbf16>
    %c128 = arith.constant 128 : index
    %c0_45 = arith.constant 0 : index
    %127 = vector.load %arg2[%c128, %c0_45] : memref<512x128xbf16, #tpu.memory_space<vmem>>, vector<128x128xbf16>
    %cst_46 = arith.constant dense<0.000000e+00> : vector<16x128xf32>
    %128 = tpu.matmul %126, %127, %cst_46 {dimension_numbers = #tpu.dot_dimension_numbers<[1], [0], [0], [1], [0, 0, 1, 1], [], []>} : vector<16x128xbf16>, vector<128x128xbf16>, vector<16x128xf32> -> vector<16x128xf32>
    %c7 = arith.constant 7 : index
    %c0_47 = arith.constant 0 : index
    %129 = vector.load %arg4[%c7, %c0_47] : memref<16x128xf32, #tpu.memory_space<vmem>>, vector<1x128xf32>
    %130 = vector.broadcast %129 : vector<1x128xf32> to vector<16x128xf32>
    %131 = arith.addf %128, %130 : vector<16x128xf32>
    %cst_48 = arith.constant 0.000000e+00 : f32
    %132 = vector.broadcast %cst_48 : f32 to vector<16x128xf32>
    %133 = arith.maximumf %131, %132 : vector<16x128xf32>
    %134 = arith.truncf %133 : vector<16x128xf32> to vector<16x128xbf16>
    %c256 = arith.constant 256 : index
    %c0_49 = arith.constant 0 : index
    %135 = vector.load %arg2[%c256, %c0_49] : memref<512x128xbf16, #tpu.memory_space<vmem>>, vector<128x128xbf16>
    %cst_50 = arith.constant dense<0.000000e+00> : vector<16x128xf32>
    %136 = tpu.matmul %134, %135, %cst_50 {dimension_numbers = #tpu.dot_dimension_numbers<[1], [0], [0], [1], [0, 0, 1, 1], [], []>} : vector<16x128xbf16>, vector<128x128xbf16>, vector<16x128xf32> -> vector<16x128xf32>
    %c8 = arith.constant 8 : index
    %c0_51 = arith.constant 0 : index
    %137 = vector.load %arg4[%c8, %c0_51] : memref<16x128xf32, #tpu.memory_space<vmem>>, vector<1x128xf32>
    %138 = vector.broadcast %137 : vector<1x128xf32> to vector<16x128xf32>
    %139 = arith.addf %136, %138 : vector<16x128xf32>
    %cst_52 = arith.constant 0.000000e+00 : f32
    %140 = vector.broadcast %cst_52 : f32 to vector<16x128xf32>
    %141 = arith.maximumf %139, %140 : vector<16x128xf32>
    %142 = arith.truncf %141 : vector<16x128xf32> to vector<16x128xbf16>
    %c384 = arith.constant 384 : index
    %c0_53 = arith.constant 0 : index
    %143 = vector.load %arg2[%c384, %c0_53] : memref<512x128xbf16, #tpu.memory_space<vmem>>, vector<128x128xbf16>
    %cst_54 = arith.constant dense<0.000000e+00> : vector<16x128xf32>
    %144 = tpu.matmul %142, %143, %cst_54 {dimension_numbers = #tpu.dot_dimension_numbers<[1], [0], [0], [1], [0, 0, 1, 1], [], []>} : vector<16x128xbf16>, vector<128x128xbf16>, vector<16x128xf32> -> vector<16x128xf32>
    %c9 = arith.constant 9 : index
    %c0_55 = arith.constant 0 : index
    %145 = vector.load %arg4[%c9, %c0_55] : memref<16x128xf32, #tpu.memory_space<vmem>>, vector<1x128xf32>
    %146 = vector.broadcast %145 : vector<1x128xf32> to vector<16x128xf32>
    %147 = arith.addf %144, %146 : vector<16x128xf32>
    %c0_56 = arith.constant 0 : index
    %c0_57 = arith.constant 0 : index
    %148 = vector.load %arg5[%c0_56, %c0_57] : memref<16x128xf32, #tpu.memory_space<vmem>>, vector<16x128xf32>
    tpu.vector_store %arg5[%c0_56, %c0_57], %147 {strides = array<i32>} : memref<16x128xf32, #tpu.memory_space<vmem>>, vector<16x128xf32>,
    return
  }
}

</mosaic_0001>

<bundles_post_ra>
// kernel: gnn_forward.1
= control target key start
LH: loop header
LB: loop body
LE: loop exit
PB: predicated region body
PF: predicated region fallthrough
CT: control target
= control target key end

     0   :  { %10 = vsyncpa [#allocation3], 0  ;;  %s1715_s18 = smov [#allocation2]   ;;  %s2009_s0 = inlined_call_operand.vmem [shape: bf16[80,16], index: 0, kind: input, shape index: {}]   ;;  %s2010_s1 = inlined_call_operand.vmem [shape: f32[16,32], index: 1, kind: input, shape index: {}]   ;;  %s2011_s2 = inlined_call_operand.hbm [shape: bf16[512,128], index: 2, kind: input, shape index: {}]   ;;  %s2012_s3 = inlined_call_operand.vmem [shape: bf16[32,384], index: 3, kind: input, shape index: {}]   ;;  %s2013_s4 = inlined_call_operand.vmem [shape: f32[16,128], index: 4, kind: input, shape index: {}]   ;;  %s2014_s5 = inlined_call_operand.vmem [shape: f32[16,128], index: 5, kind: output, shape index: {}]  }
   0x1   :  { %s20_s19 = sshll.u32 %s1715_s18, 4  ;;  %s1691_s22 = scalar_lea.hbm %s2011_s2, 4096  ;;  %s21_s19 = int_to_ptr.vmem [resolvable:$true] %s20_s19 }
   0x2   :  { %p1692_p0 = scmp.ne.s32.totalorder %s2011_s2, %s1691_s22  ;;  %p1695_p1 = scmp.lt.u32.totalorder %s1691_s22, %s2011_s2 }
   0x4   :  { %p1697_p2 = pnand %p1695_p1, %p1692_p0 }
   0x6   :  { %1700 = shalt.err (!%p1697_p2)
}
   0x7   :  { %s1701_s27 = scalar_lea.vmem %s21_s19, 4096  ;;  %p1706_p4 = scmp.lt.s32.totalorder %s21_s19, %s21_s19 }
   0x8   :  { %p1702_p3 = scmp.ne.s32.totalorder %s21_s19, %s1701_s27  ;;  %p1707_p5 = scmp.lt.s32.totalorder %s1701_s27, %s1701_s27 }
   0xa   :  { %p1708_p6 = por %p1707_p5, %p1706_p4 }
   0xc   :  { %p1709_p7 = pnand %p1708_p6, %p1702_p3 }
   0xe   :  { %1712 = shalt.err (!%p1709_p7)
}
   0xf   :  { %s1716_s28 = smov 64   ;;  %s1717_s29 = smov 4  }
  0x10   :  { %26 = dma.hbm_to_vmem [thread:$0]  %s2011_s2, 4096, %s21_s19, [#allocation3], %s1716_s28, %s1716_s28, %s1717_s29  }
  0x11   :  { %1713 = dma.done.wait [#allocation3], 4096  }
  0x12   :  { %1714 = vsyncadd [#allocation3], 4294963200  ;;  %v1610_v0 = vld [vmem:[#allocation2 + $0x8] sm:$0xff]   ;;  %vm67_vm0 = vcmask 130048   ;;  %v1611_v1 = vld [vmem:[%s2009_s0 + $0x18] sm:$0xff]   ;;  %v1718_v4 = vmov 0.0  }
  0x13   :  { %1458 = vmatprep.subr.bf16.mxu1 %v1610_v0  ;;  %v1612_v2 = vld [vmem:[%s2009_s0 + $0x20] sm:$0xff]   ;;  %1460 = vmatprep.mubr.msk.bf16.mxu1 %vm67_vm0, %v1611_v1  ;;  %vm1719_vm1 = vmmov 0   ;;  %v1615_v10 = vld [vmem:[%s2009_s0 + $0x8] sm:$0xff]   ;;  %s1720_s16 = smov 96   ;;  %v1808_v20 = vld [vmem:[%s2009_s0 + $0x10] sm:$0xff]   ;;  %vm281_vm2 = vcmask 261120  }
  0x14   :  { %1459 = vmatpush3.bf16.msra.mxu1 %v1610_v0  ;;  %v1613_v3 = vld [vmem:[#allocation2] sm:$0xff]   ;;  %1472 = vmatprep.mubr.msk.bf16.mxu0 %vm67_vm0, %v1615_v10  ;;  %v1832_v34 = vld [vmem:[%s2010_s1 + $0x8] sm:$0xff]  ;;  %vm934_vm5 = vcmask 523264  }
  0x15   :  { %1464 = vmatprep.subr.bf16.mxu1 %v1718_v4  ;;  %v1614_v5 = vld [vmem:[%s2009_s0] sm:$0xff]   ;;  %vm48_vm4 = vcmp.gt.f32.partialorder %v1832_v34, 0.5 }
  0x16   :  { %v1330_v11 = vld [vmem:[%s2013_s4] ss:$0 sm:$0xff] }
  0x17   :  { %1461 = vmatmul.mubr.msk.bf16.vlgmr.msra.gmra.mrb[0].mxu1 %vm67_vm0, %v1612_v2  ;;  %v1827_v33 = vld [vmem:[%s2010_s1] sm:$0xff]  ;;  %s1721_s1 = smov 32  }
  0x18   :  { %1465 = vmatpush3.bf16.msra.mxu1 %v1613_v3  ;;  %1466 = vmatprep.mubr.msk.bf16.mxu1 %vm1719_vm1, %v1718_v4  ;;  %vm47_vm3 = vcmp.gt.f32.partialorder %v1827_v33, 0.5 }
  0x19   :  { %1476 = vmatprep.subr.bf16.mxu1 %v1718_v4 }
  0x1f   :  { %1467 = vmatmul.mubr.msk.bf16.vlgmr.msra.gmra.mrb[4].mxu1 %vm67_vm0, %v1614_v5 }
  0x20   :  { %1480 = vmatprep.mubr.msk.bf16.mxu1 %vm1719_vm1, %v1718_v4 }
  0xea   :  { %v1783_v6 = vpop.f32.mrb[0].mxu1 }
  0xeb   :  { %v1785_v7 = vpop.f32.mrb[1].mxu1 }
  0xec   :  { %v1787_v8 = vpop.f32.mrb[2].mxu1 }
  0xed   :  { %v1789_v9 = vpop.f32.mrb[3].mxu1 }
  0xf2   :  { %v178_v12 = vpop.f32.mrb[4].mxu1 }
  0xf3   :  { %v1468_v13 = vpop.f32.mrb[5].mxu1  ;;  %v1798_v15 = vadd.f32 %v1330_v11, %v178_v12 }
  0xf4   :  { %v181_v14 = vpop.f32.mrb[6].mxu1 }
  0xf5   :  { %v1800_v16 = vadd.f32 %v1330_v11, %v181_v14  ;;  %v1469_v17 = vpop.f32.mrb[7].mxu1 }
  0xf6   :  { %v1617_v17 = vld [vmem:[#allocation2 + $0x10] sm:$0xff]  }
  0xf7   :  { %v185_v18 = vpack.c.bf16 %v1800_v16, %v1798_v15 }
  0xf9   :  { %197 = vrot.lane.b32.xlu0 %v185_v18, %s1720_s16 }
 0x16b   :  { %v198_v19 = vpop.permute.xlu0 %197 }
 0x16c   :  { %1470 = vmatprep.subr.bf16.mxu0 %v198_v19 }
 0x16d   :  { %1471 = vmatpush3.bf16.msra.mxu0 %v198_v19 }
 0x16e   :  { %1484 = vmatprep.subr.bf16.mxu0 %v1718_v4 }
 0x170   :  { %1473 = vmatmul.mubr.msk.bf16.vlgmr.msra.gmra.mrb[0].mxu0 %vm67_vm0, %v1808_v20 }
 0x171   :  { %1488 = vmatprep.mubr.msk.bf16.mxu0 %vm1719_vm1, %v1718_v4 }
 0x243   :  { %v1474_v21 = vpop.f32.mrb[0].mxu0 }
 0x244   :  { %v257_v22 = vadd.f32 %v1474_v21, %v1783_v6  ;;  %v240_v23 = vpop.f32.mrb[1].mxu0 }
 0x245   :  { %v255_v24 = vadd.f32 %v240_v23, %v1785_v7  ;;  %v1475_v25 = vpop.f32.mrb[2].mxu0 }
 0x246   :  { %v258_v26 = vadd.f32 %v1475_v25, %v1787_v8  ;;  %v243_v27 = vpop.f32.mrb[3].mxu0 }
 0x247   :  { %v256_v28 = vadd.f32 %v243_v27, %v1789_v9 }
 0x248   :  { %v280_v29 = vpack.c.bf16 %v258_v26, %v257_v22 }
 0x249   :  { %v279_v30 = vpack.c.bf16 %v256_v28, %v255_v24 }
 0x24a   :  { %v289_v32 = vsel %vm281_vm2, %v280_v29, 0 }
 0x24b   :  { %v286_v31 = vsel %vm281_vm2, %v279_v30, 0 }
 0x24c   :  { %1477 = vmatpush3.bf16.xpose.msra.mxu1 %v286_v31  ;;  %v1340_v31 = vld [vmem:[%s2013_s4 + $0x1] ss:$0 sm:$0xff] }
 0x24d   :  { %1478 = vmatprep.subr.bf16.mxu1 %v1718_v4 }
 0x254   :  { %1479 = vmatpush3.bf16.xpose.msra.mxu1 %v289_v32 }
 0x25b   :  { %1481 = vmatmul.mubr.msk.bf16.vlgmr.msra.gmra.mrb[8].mxu1 %vm281_vm2, %v185_v18  ;;  %v1618_v18 = vld [vmem:[#allocation2 + $0x18] sm:$0xff]  }
 0x25c   :  { %1502 = vmatprep.mubr.msk.bf16.mxu1 %vm67_vm0, %v1615_v10 }
 0x32e   :  { %v325_v35 = vpop.f32.mrb[8].mxu1 }
 0x32f   :  { %v332_v36 = vsel %vm47_vm3, %v325_v35, -1e+30  ;;  %v1482_v37 = vpop.f32.mrb[9].mxu1 }
 0x330   :  { %v328_v38 = vpop.f32.mrb[10].mxu1  ;;  %v334_v39 = vsel %vm281_vm2, %v332_v36, -inf }
 0x331   :  { %v333_v40 = vsel %vm48_vm4, %v328_v38, -1e+30  ;;  %335 = vmax.xlane.f32.xlu0 %v334_v39  ;;  %v1483_v41 = vpop.f32.mrb[11].mxu1 }
 0x332   :  { %v337_v42 = vsel %vm281_vm2, %v333_v40, -inf }
 0x333   :  { %338 = vmax.xlane.f32.xlu1 %v337_v42 }
 0x344   :  { %263 = vrot.lane.b32.xlu1 %v1785_v7, %s1721_s1 }
 0x348   :  { %265 = vrot.lane.b32.xlu1 %v1789_v9, %s1721_s1 }
 0x34c   :  { %267 = vrot.lane.b32.xlu1 %v1783_v6, %s1721_s1 }
 0x350   :  { %269 = vrot.lane.b32.xlu1 %v1787_v8, %s1721_s1 }
 0x3be   :  { %v336_v43 = vpop.xlane.xlu0 %335 }
 0x3bf   :  { %v340_v44 = vsub.f32 %v332_v36, %v336_v43 }
 0x3c0   :  { %v339_v45 = vpop.xlane.xlu1 %338 }
 0x3c1   :  { %v342_v46 = vmul.f32 1.442695, %v340_v44  ;;  %v341_v59 = vsub.f32 %v333_v40, %v339_v45 }
 0x3c3   :  { %1655 = vpow2.f32 %v342_v46  ;;  %v344_v61 = vmul.f32 1.442695, %v341_v59 }
 0x3c4   :  { %v264_v47 = vpop.permute.xlu1 %263 }
 0x3c5   :  { %v275_v49 = vadd.f32 %v264_v47, %v240_v23  ;;  %1657 = vpow2.f32 %v344_v61 }
 0x3c8   :  { %v266_v48 = vpop.permute.xlu1 %265 }
 0x3c9   :  { %v276_v50 = vadd.f32 %v266_v48, %v243_v27 }
 0x3cb   :  { %v361_v51 = vpack.c.bf16 %v276_v50, %v275_v49 }
 0x3cc   :  { %v268_v52 = vpop.permute.xlu1 %267 }
 0x3cd   :  { %v1656_v53 = vpop.eup %1655  ;;  %365 = vrot.lane.b32.xlu0 %v361_v51, %s1720_s16  ;;  %v277_v57 = vadd.f32 %v1474_v21, %v268_v52 }
 0x3ce   :  { %v346_v54 = vmul.f32 %v1656_v53, %v1827_v33 }
 0x3cf   :  { %v1658_v62 = vpop.eup %1657 }
 0x3d0   :  { %v270_v55 = vpop.permute.xlu1 %269  ;;  %v348_v56 = vsel %vm281_vm2, %v346_v54, 0.0  ;;  %v347_v63 = vmul.f32 %v1658_v62, %v1832_v34 }
 0x3d1   :  { %v278_v58 = vadd.f32 %v1475_v25, %v270_v55  ;;  %349 = vadd.xlane.f32.xlu1 %v348_v56 }
 0x3d2   :  { %v351_v0 = vsel %vm281_vm2, %v347_v63, 0.0 }
 0x3d3   :  { %v362_v60 = vpack.c.bf16 %v278_v58, %v277_v57 }
 0x3ec   :  { %352 = vadd.xlane.f32.xlu0 %v351_v0 }
 0x402   :  { %367 = vrot.lane.b32.xlu0 %v362_v60, %s1720_s16 }
 0x406   :  { %373 = vrot.lane.b32.xlu0 %v1798_v15, %s1721_s1 }
 0x40a   :  { %375 = vrot.lane.b32.xlu0 %v1800_v16, %s1721_s1 }
 0x40e   :  { %545 = vrot.lane.b32.xlu0 %v1785_v7, %s1720_s16 }
 0x412   :  { %547 = vrot.lane.b32.xlu0 %v1789_v9, %s1720_s16 }
 0x416   :  { %549 = vrot.lane.b32.xlu0 %v1783_v6, %s1720_s16 }
 0x41a   :  { %551 = vrot.lane.b32.xlu0 %v1787_v8, %s1720_s16 }
 0x43f   :  { %v366_v1 = vpop.permute.xlu0 %365 }
 0x440   :  { %1485 = vmatpush3.bf16.msra.mxu0 %v366_v1 }
 0x441   :  { %1486 = vmatprep.subr.bf16.mxu0 %v1718_v4 }
 0x45e   :  { %v350_v2 = vpop.xlane.xlu1 %349 }
 0x45f   :  { %v354_v3 = vmax.f32 %v350_v2, 1e-30 }
 0x461   :  { %1659 = vrcp.f32 %v354_v3 }
 0x46b   :  { %v1660_v12 = vpop.eup %1659 }
 0x46c   :  { %v358_v14 = vmul.f32 %v1660_v12, %v346_v54 }
 0x479   :  { %v353_v5 = vpop.xlane.xlu0 %352 }
 0x47a   :  { %v355_v10 = vmax.f32 %v353_v5, 1e-30 }
 0x47c   :  { %1661 = vrcp.f32 %v355_v10 }
 0x47d   :  { %v368_v11 = vpop.permute.xlu0 %367 }
 0x47e   :  { %1487 = vmatpush3.bf16.msra.mxu0 %v368_v11 }
 0x47f   :  { %1492 = vmatprep.subr.bf16.mxu0 %v1718_v4 }
 0x481   :  { %v374_v19 = vpop.permute.xlu0 %373 }
 0x485   :  { %v376_v24 = vpop.permute.xlu0 %375 }
 0x486   :  { %v1662_v13 = vpop.eup %1661 }
 0x487   :  { %v359_v15 = vmul.f32 %v1662_v13, %v347_v63 }
 0x489   :  { %v360_v16 = vpack.c.bf16 %v359_v15, %v358_v14  ;;  %v546_v42 = vpop.permute.xlu0 %545 }
 0x48b   :  { %1489 = vmatmul.mubr.msk.bf16.vlgmr.msra.gmra.mrb[4].mxu0 %vm281_vm2, %v360_v16 }
 0x48c   :  { %1496 = vmatprep.mubr.msk.bf16.mxu0 %vm1719_vm1, %v1718_v4  ;;  %1493 = vmatpush3.bf16.msra.mxu0 %v1617_v17 }
 0x48d   :  { %1494 = vmatprep.subr.bf16.mxu0 %v1718_v4  ;;  %v548_v43 = vpop.permute.xlu0 %547 }
 0x490   :  { %1495 = vmatpush3.bf16.msra.mxu0 %v1618_v18 }
 0x491   :  { %1506 = vmatprep.subr.bf16.mxu0 %v1718_v4  ;;  %v550_v44 = vpop.permute.xlu0 %549 }
 0x495   :  { %v552_v48 = vpop.permute.xlu0 %551 }
 0x55e   :  { %v416_v21 = vpop.f32.mrb[4].mxu0 }
 0x55f   :  { %v417_v22 = vadd.f32 %v416_v21, %v374_v19  ;;  %v1490_v23 = vpop.f32.mrb[5].mxu0 }
 0x560   :  { %v419_v25 = vpop.f32.mrb[6].mxu0 }
 0x561   :  { %v420_v26 = vadd.f32 %v419_v25, %v376_v24  ;;  %v1491_v27 = vpop.f32.mrb[7].mxu0  ;;  %v423_v28 = vmax.f32 %v417_v22, 0.0  ;;  %v1621_v24 = vld [vmem:[%s2012_s3 + $0x4] ss:$12 sps:$4 sm:$0xff]  }
 0x563   :  { %v424_v29 = vmax.f32 %v420_v26, 0.0 }
 0x565   :  { %v425_v30 = vpack.c.bf16 %v424_v29, %v423_v28 }
 0x567   :  { %1497 = vmatmul.mubr.msk.bf16.vlgmr.msra.gmra.mrb[8].mxu0 %vm281_vm2, %v425_v30  ;;  %v1619_v30 = vld [vmem:[%s2012_s3] ss:$12 sps:$4 sm:$0xff]  }
 0x568   :  { %1510 = vmatprep.mubr.msk.bf16.mxu0 %vm1719_vm1, %v1718_v4 }
 0x63a   :  { %v484_v32 = vpop.f32.mrb[8].mxu0 }
 0x63b   :  { %v1498_v35 = vpop.f32.mrb[9].mxu0  ;;  %v1881_v37 = vadd.f32 %v1340_v31, %v484_v32  ;;  %v1622_v32 = vld [vmem:[%s2012_s3 + $0x8] ss:$12 sps:$4 sm:$0xff]  }
 0x63c   :  { %v487_v36 = vpop.f32.mrb[10].mxu0  ;;  %v1625_v35 = vld [vmem:[%s2012_s3 + $0x1c] ss:$12 sps:$4 sm:$0xff]  }
 0x63d   :  { %v1883_v38 = vadd.f32 %v1340_v31, %v487_v36  ;;  %v1499_v39 = vpop.f32.mrb[11].mxu0  ;;  %v1623_v36 = vld [vmem:[%s2012_s3 + $0x18] ss:$12 sps:$4 sm:$0xff]  }
 0x63f   :  { %v491_v40 = vpack.c.bf16 %v1883_v38, %v1881_v37 }
 0x641   :  { %493 = vrot.lane.b32.xlu1 %v491_v40, %s1720_s16 }
 0x6b3   :  { %v494_v41 = vpop.permute.xlu1 %493 }
 0x6b4   :  { %1500 = vmatprep.subr.bf16.mxu1 %v494_v41 }
 0x6b5   :  { %1501 = vmatpush3.bf16.msra.mxu1 %v494_v41 }
 0x6b6   :  { %1514 = vmatprep.subr.bf16.mxu1 %v1718_v4 }
 0x6b8   :  { %1503 = vmatmul.mubr.msk.bf16.vlgmr.msra.gmra.mrb[12].mxu1 %vm67_vm0, %v1808_v20 }
 0x6b9   :  { %1518 = vmatprep.mubr.msk.bf16.mxu1 %vm1719_vm1, %v1718_v4 }
 0x78b   :  { %v1504_v45 = vpop.f32.mrb[12].mxu1 }
 0x78c   :  { %v563_v46 = vadd.f32 %v1504_v45, %v1783_v6  ;;  %v530_v47 = vpop.f32.mrb[13].mxu1  ;;  %v559_v51 = vadd.f32 %v1504_v45, %v550_v44 }
 0x78d   :  { %v561_v49 = vadd.f32 %v530_v47, %v1785_v7  ;;  %v1505_v50 = vpop.f32.mrb[14].mxu1  ;;  %v557_v20 = vadd.f32 %v546_v42, %v530_v47 }
 0x78e   :  { %v560_v52 = vadd.f32 %v1505_v50, %v552_v48  ;;  %v564_v53 = vadd.f32 %v1505_v50, %v1787_v8  ;;  %v533_v54 = vpop.f32.mrb[15].mxu1  ;;  %v1627_v48 = vld [vmem:[#allocation2 + $0x20] sm:$0xff]   ;;  %v1629_v50 = vld [vmem:[#allocation2 + $0x30] sm:$0xff]  }
 0x78f   :  { %v558_v55 = vadd.f32 %v548_v43, %v533_v54  ;;  %v562_v56 = vadd.f32 %v533_v54, %v1789_v9  ;;  %v1633_v54 = vld [vmem:[#allocation2 + $0x50] sm:$0xff]  }
 0x790   :  { %v566_v57 = vpack.c.bf16 %v560_v52, %v559_v51  ;;  %v647_v58 = vpack.c.bf16 %v564_v53, %v563_v46  ;;  %v1630_v51 = vld [vmem:[#allocation2 + $0x38] sm:$0xff]   ;;  %v1631_v52 = vld [vmem:[#allocation2 + $0x40] sm:$0xff]   ;;  %v1632_v53 = vld [vmem:[#allocation2 + $0x48] sm:$0xff]  }
 0x791   :  { %v565_v59 = vpack.c.bf16 %v558_v55, %v557_v20  ;;  %v646_v60 = vpack.c.bf16 %v562_v56, %v561_v49  ;;  %v1628_v49 = vld [vmem:[#allocation2 + $0x28] sm:$0xff]   ;;  %v1634_v20 = vld [vmem:[#allocation2 + $0x58] sm:$0xff]   ;;  %v1635_v55 = vld [vmem:[#allocation2 + $0x60] sm:$0xff]  }
 0x792   :  { %v574_v7 = vsel %vm281_vm2, %v566_v57, 0  ;;  %v1636_v56 = vld [vmem:[#allocation2 + $0x68] sm:$0xff]   ;;  %v1356_v57 = vld [vmem:[%s2013_s4 + $0x2] ss:$0 sm:$0xff] }
 0x793   :  { %v571_v6 = vsel %vm281_vm2, %v565_v59, 0 }
 0x794   :  { %1507 = vmatpush3.bf16.xpose.msra.mxu0 %v571_v6 }
 0x795   :  { %1508 = vmatprep.subr.bf16.mxu0 %v1718_v4 }
 0x79c   :  { %1509 = vmatpush3.bf16.xpose.msra.mxu0 %v574_v7  ;;  %v1359_v7 = vld [vmem:[%s2013_s4 + $0x3] ss:$0 sm:$0xff] }
 0x79d   :  { %1522 = vmatprep.subr.bf16.mxu0 %v1718_v4 }
 0x7a3   :  { %1511 = vmatmul.mubr.msk.bf16.vlgmr.msra.gmra.mrb[12].mxu0 %vm281_vm2, %v491_v40 }
 0x7a4   :  { %1526 = vmatprep.mubr.msk.bf16.mxu0 %vm1719_vm1, %v1718_v4  ;;  %1523 = vmatpush3.bf16.msra.mxu0 %v1622_v32 }
 0x7a5   :  { %1524 = vmatprep.subr.bf16.mxu0 %v1718_v4 }
 0x876   :  { %v610_v8 = vpop.f32.mrb[12].mxu0 }
 0x877   :  { %v617_v9 = vsel %vm47_vm3, %v610_v8, -1e+30  ;;  %v1512_v61 = vpop.f32.mrb[13].mxu0 }
 0x878   :  { %v613_v62 = vpop.f32.mrb[14].mxu0  ;;  %v619_v63 = vsel %vm281_vm2, %v617_v9, -inf }
 0x879   :  { %v618_v0 = vsel %vm48_vm4, %v613_v62, -1e+30  ;;  %620 = vmax.xlane.f32.xlu1 %v619_v63  ;;  %v1513_v1 = vpop.f32.mrb[15].mxu0 }
 0x87a   :  { %v622_v2 = vsel %vm281_vm2, %v618_v0, -inf }
 0x87b   :  { %623 = vmax.xlane.f32.xlu0 %v622_v2 }
 0x906   :  { %v621_v3 = vpop.xlane.xlu1 %620 }
 0x907   :  { %v625_v5 = vsub.f32 %v617_v9, %v621_v3 }
 0x908   :  { %v624_v10 = vpop.xlane.xlu0 %623 }
 0x909   :  { %v627_v11 = vmul.f32 1.442695, %v625_v5  ;;  %v626_v12 = vsub.f32 %v618_v0, %v624_v10 }
 0x90b   :  { %1663 = vpow2.f32 %v627_v11  ;;  %v629_v13 = vmul.f32 1.442695, %v626_v12 }
 0x90d   :  { %1665 = vpow2.f32 %v629_v13 }
 0x915   :  { %v1664_v14 = vpop.eup %1663 }
 0x916   :  { %v631_v15 = vmul.f32 %v1664_v14, %v1827_v33 }
 0x917   :  { %v1666_v16 = vpop.eup %1665 }
 0x918   :  { %v633_v17 = vsel %vm281_vm2, %v631_v15, 0.0  ;;  %v632_v18 = vmul.f32 %v1666_v16, %v1832_v34 }
 0x919   :  { %634 = vadd.xlane.f32.xlu0 %v633_v17 }
 0x91a   :  { %v636_v19 = vsel %vm281_vm2, %v632_v18, 0.0 }
 0x91b   :  { %637 = vadd.xlane.f32.xlu1 %v636_v19  ;;  %v1362_v19 = vld [vmem:[%s2013_s4 + $0x4] ss:$0 sm:$0xff] }
 0x92c   :  { %652 = vrot.lane.b32.xlu1 %v647_v58, %s1720_s16 }
 0x92f   :  { %650 = vrot.lane.b32.xlu0 %v646_v60, %s1720_s16 }
 0x930   :  { %658 = vrot.lane.b32.xlu1 %v1881_v37, %s1721_s1  ;;  %v1626_v37 = vld [vmem:[%s2012_s3 + $0x20] ss:$12 sps:$4 sm:$0xff]  }
 0x931   :  { %1525 = vmatpush3.bf16.msra.mxu0 %v1626_v37 }
 0x932   :  { %1542 = vmatprep.subr.bf16.mxu0 %v1718_v4 }
 0x933   :  { %660 = vrot.lane.b32.xlu0 %v1883_v38, %s1721_s1  ;;  %v1722_v38 = vmov 0  }
 0x9a6   :  { %v635_v33 = vpop.xlane.xlu0 %634 }
 0x9a7   :  { %v639_v21 = vmax.f32 %v635_v33, 1e-30  ;;  %v1363_v33 = vld [vmem:[%s2013_s4 + $0x5] ss:$0 sm:$0xff] }
 0x9a8   :  { %v638_v22 = vpop.xlane.xlu1 %637 }
 0x9a9   :  { %1667 = vrcp.f32 %v639_v21  ;;  %v640_v23 = vmax.f32 %v638_v22, 1e-30 }
 0x9aa   :  { %v651_v34 = vpop.permute.xlu0 %650 }
 0x9ab   :  { %1669 = vrcp.f32 %v640_v23  ;;  %1515 = vmatpush3.bf16.msra.mxu1 %v651_v34 }
 0x9ac   :  { %1516 = vmatprep.subr.bf16.mxu1 %v1718_v4  ;;  %v653_v25 = vpop.permute.xlu1 %652 }
 0x9ae   :  { %v661_v40 = vpop.permute.xlu0 %660 }
 0x9af   :  { %1517 = vmatpush3.bf16.msra.mxu1 %v653_v25 }
 0x9b0   :  { %752 = vmatprep.subr.bf16.mxu1 %v1621_v24  ;;  %v659_v42 = vpop.permute.xlu1 %658 }
 0x9b3   :  { %v1668_v26 = vpop.eup %1667 }
 0x9b4   :  { %v643_v28 = vmul.f32 %v1668_v26, %v631_v15 }
 0x9b5   :  { %v1670_v27 = vpop.eup %1669 }
 0x9b6   :  { %v644_v29 = vmul.f32 %v1670_v27, %v632_v18 }
 0x9b8   :  { %v645_v31 = vpack.c.bf16 %v644_v29, %v643_v28 }
 0x9ba   :  { %1519 = vmatmul.mubr.msk.bf16.vlgmr.msra.gmra.mrb[16].mxu1 %vm281_vm2, %v645_v31 }
 0x9bb   :  { %753 = vmatpush1.bf16.msra.mxu1 %v1619_v30  ;;  %784 = vmatprep.mubr.bf16.mxu1 %v1722_v38 }
 0x9bc   :  { %754 = vmatprep.subr.bf16.mxu1 %v1625_v35 }
 0x9bf   :  { %755 = vmatpush1.bf16.msra.mxu1 %v1623_v36 }
 0x9c0   :  { %1530 = vmatprep.subr.bf16.mxu1 %v1718_v4 }
 0xa8d   :  { %v701_v39 = vpop.f32.mrb[16].mxu1 }
 0xa8e   :  { %v1520_v41 = vpop.f32.mrb[17].mxu1  ;;  %v702_v44 = vadd.f32 %v701_v39, %v659_v42  ;;  %v1639_v42 = vld [vmem:[#allocation2 + $0x80] sm:$0xff]  }
 0xa8f   :  { %v704_v43 = vpop.f32.mrb[18].mxu1  ;;  %v1638_v41 = vld [vmem:[#allocation2 + $0x78] sm:$0xff]  }
 0xa90   :  { %v705_v45 = vadd.f32 %v704_v43, %v661_v40  ;;  %v1521_v46 = vpop.f32.mrb[19].mxu1  ;;  %v1637_v40 = vld [vmem:[#allocation2 + $0x70] sm:$0xff]   ;;  %v1640_v43 = vld [vmem:[#allocation2 + $0x88] sm:$0xff]  }
 0xa91   :  { %v1643_v46 = vld [vmem:[#allocation2 + $0xa0] sm:$0xff]  }
 0xa92   :  { %v708_v47 = vpack.c.bf16 %v705_v45, %v702_v44  ;;  %v1641_v44 = vld [vmem:[#allocation2 + $0x90] sm:$0xff]   ;;  %v1642_v45 = vld [vmem:[#allocation2 + $0x98] sm:$0xff]  }
 0xa94   :  { %1354 = vmatmul.mubr.msk.bf16.vlgmr.msra.gmra.mrb[20].mxu1 %vm281_vm2, %v708_v47  ;;  %1527 = vmatmul.mubr.msk.bf16.vlgmr.msra.gmra.mrb[16].mxu0 %vm281_vm2, %v708_v47  ;;  %v1644_v47 = vld [vmem:[#allocation2 + $0xa8] sm:$0xff]  }
 0xa95   :  { %1538 = vmatprep.mubr.msk.bf16.mxu1 %vm1719_vm1, %v1718_v4  ;;  %1558 = vmatprep.mubr.msk.bf16.mxu0 %vm1719_vm1, %v1718_v4 }
 0xa96   :  { %1531 = vmatpush3.bf16.msra.mxu1 %v1627_v48  ;;  %1543 = vmatpush3.bf16.msra.mxu0 %v1631_v52  ;;  %v1364_v48 = vld [vmem:[%s2013_s4 + $0x6] ss:$0 sm:$0xff] }
 0xa97   :  { %1532 = vmatprep.subr.bf16.mxu1 %v1718_v4  ;;  %1544 = vmatprep.subr.bf16.mxu0 %v1718_v4 }
 0xa9a   :  { %1533 = vmatpush3.bf16.msra.mxu1 %v1628_v49  ;;  %1545 = vmatpush3.bf16.msra.mxu0 %v1632_v53 }
 0xa9b   :  { %1534 = vmatprep.subr.bf16.mxu1 %v1718_v4  ;;  %1546 = vmatprep.subr.bf16.mxu0 %v1718_v4 }
 0xa9e   :  { %1535 = vmatpush3.bf16.msra.mxu1 %v1629_v50  ;;  %1547 = vmatpush3.bf16.msra.mxu0 %v1633_v54 }
 0xa9f   :  { %1536 = vmatprep.subr.bf16.mxu1 %v1718_v4  ;;  %1548 = vmatprep.subr.bf16.mxu0 %v1718_v4 }
 0xaa2   :  { %1537 = vmatpush3.bf16.msra.mxu1 %v1630_v51  ;;  %1549 = vmatpush3.bf16.msra.mxu0 %v1634_v20 }
 0xaa3   :  { %1562 = vmatprep.subr.bf16.mxu1 %v1718_v4  ;;  %1550 = vmatprep.subr.bf16.mxu0 %v1718_v4 }
 0xaa6   :  { %1551 = vmatpush3.bf16.msra.mxu0 %v1635_v55 }
 0xaa7   :  { %1552 = vmatprep.subr.bf16.mxu0 %v1718_v4 }
 0xaaa   :  { %1553 = vmatpush3.bf16.msra.mxu0 %v1636_v56 }
 0xaab   :  { %1554 = vmatprep.subr.bf16.mxu0 %v1718_v4 }
 0xaae   :  { %1555 = vmatpush3.bf16.msra.mxu0 %v1637_v40 }
 0xaaf   :  { %1556 = vmatprep.subr.bf16.mxu0 %v1718_v4 }
 0xab2   :  { %1557 = vmatpush3.bf16.msra.mxu0 %v1638_v41 }
 0xab3   :  { %1582 = vmatprep.subr.bf16.mxu0 %v1718_v4 }
 0xb67   :  { %v786_v58 = vpop.f32.mrb[20].mxu1  ;;  %v829_v59 = vpop.f32.mrb[16].mxu0 }
 0xb68   :  { %v844_v60 = vadd.f32 %v1356_v57, %v786_v58  ;;  %v788_v6 = vpop.f32.mrb[21].mxu1  ;;  %v1528_v8 = vpop.f32.mrb[17].mxu0  ;;  %v880_v23 = vadd.f32 %v1362_v19, %v829_v59  ;;  %v1646_v58 = vld [vmem:[#allocation2 + $0xb8] sm:$0xff]   ;;  %v1647_v59 = vld [vmem:[#allocation2 + $0xc0] sm:$0xff]  }
 0xb69   :  { %v790_v9 = vpop.f32.mrb[22].mxu1  ;;  %v832_v61 = vpop.f32.mrb[18].mxu0  ;;  %v862_v2 = vadd.f32 %v1359_v7, %v788_v6  ;;  %v1649_v6 = vld [vmem:[#allocation2 + $0xd0] sm:$0xff]   ;;  %v1651_v8 = vld [vmem:[#allocation2 + $0xe0] sm:$0xff]  }
 0xb6a   :  { %v1357_v62 = vmul.f32 -1.442695, %v844_v60  ;;  %v845_v63 = vadd.f32 %v1356_v57, %v790_v9  ;;  %v792_v0 = vpop.f32.mrb[23].mxu1  ;;  %v1529_v1 = vpop.f32.mrb[19].mxu0  ;;  %v881_v26 = vadd.f32 %v1362_v19, %v832_v61  ;;  %v1645_v57 = vld [vmem:[#allocation2 + $0xb0] sm:$0xff]   ;;  %v1648_v60 = vld [vmem:[#allocation2 + $0xc8] sm:$0xff]  }
 0xb6b   :  { %v863_v5 = vadd.f32 %v1359_v7, %v792_v0  ;;  %v1360_v10 = vmul.f32 -1.442695, %v862_v2  ;;  %v1650_v7 = vld [vmem:[#allocation2 + $0xd8] sm:$0xff]   ;;  %v1652_v9 = vld [vmem:[#allocation2 + $0xe8] sm:$0xff]   ;;  %v1370_v61 = vld [vmem:[%s2013_s4 + $0x7] ss:$0 sm:$0xff] }
 0xb6c   :  { %1671 = vpow2.f32 %v1357_v62  ;;  %v1358_v3 = vmul.f32 -1.442695, %v845_v63 }
 0xb6d   :  { %v1361_v11 = vmul.f32 -1.442695, %v863_v5 }
 0xb6e   :  { %1673 = vpow2.f32 %v1358_v3 }
 0xb6f   :  { %1675 = vpow2.f32 %v1360_v10 }
 0xb70   :  { %1677 = vpow2.f32 %v1361_v11 }
 0xb76   :  { %v1672_v12 = vpop.eup %1671 }
 0xb77   :  { %v852_v13 = vadd.f32 1.0, %v1672_v12  ;;  %v1653_v12 = vld [vmem:[#allocation2 + $0xf0] sm:$0xff]  }
 0xb78   :  { %v1674_v14 = vpop.eup %1673 }
 0xb79   :  { %1679 = vrcp.f32 %v852_v13  ;;  %v853_v15 = vadd.f32 1.0, %v1674_v14  ;;  %v1676_v16 = vpop.eup %1675  ;;  %v1654_v13 = vld [vmem:[#allocation2 + $0xf8] sm:$0xff]   ;;  %v1379_v14 = vld [vmem:[%s2013_s4 + $0x8] ss:$0 sm:$0xff] }
 0xb7a   :  { %v1678_v17 = vpop.eup %1677  ;;  %v870_v18 = vadd.f32 1.0, %v1676_v16 }
 0xb7b   :  { %1681 = vrcp.f32 %v853_v15  ;;  %v871_v21 = vadd.f32 1.0, %v1678_v17 }
 0xb7c   :  { %1683 = vrcp.f32 %v870_v18 }
 0xb7d   :  { %1685 = vrcp.f32 %v871_v21 }
 0xb83   :  { %v1680_v22 = vpop.eup %1679 }
 0xb84   :  { %v886_v34 = vmul.f32 %v1680_v22, %v1363_v33 }
 0xb85   :  { %v1682_v24 = vpop.eup %1681 }
 0xb86   :  { %v888_v25 = vadd.f32 %v886_v34, %v880_v23  ;;  %v887_v27 = vmul.f32 %v1682_v24, %v1363_v33  ;;  %v1684_v29 = vpop.eup %1683 }
 0xb87   :  { %v1686_v30 = vpop.eup %1685  ;;  %v892_v31 = vsub.f32 1.0, %v1684_v29 }
 0xb88   :  { %1687 = vtanh.f32 %v888_v25  ;;  %v889_v28 = vadd.f32 %v887_v27, %v881_v26  ;;  %v893_v36 = vsub.f32 1.0, %v1686_v30 }
 0xb8a   :  { %1689 = vtanh.f32 %v889_v28 }
 0xb92   :  { %v1688_v32 = vpop.eup %1687 }
 0xb93   :  { %v894_v35 = vmul.f32 %v1688_v32, %v892_v31 }
 0xb94   :  { %v1690_v37 = vpop.eup %1689 }
 0xb95   :  { %v895_v38 = vmul.f32 %v1690_v37, %v893_v36 }
 0xb97   :  { %v896_v39 = vpack.c.bf16 %v895_v38, %v894_v35 }
 0xb99   :  { %1539 = vmatmul.mubr.msk.bf16.vlgmr.msra.gmra.mrb[24].mxu1 %vm934_vm5, %v896_v39 }
 0xb9a   :  { %1578 = vmatprep.mubr.msk.bf16.mxu1 %vm1719_vm1, %v1718_v4  ;;  %1563 = vmatpush3.bf16.msra.mxu1 %v1639_v42 }
 0xb9b   :  { %1564 = vmatprep.subr.bf16.mxu1 %v1718_v4 }
 0xb9e   :  { %1565 = vmatpush3.bf16.msra.mxu1 %v1640_v43 }
 0xb9f   :  { %1566 = vmatprep.subr.bf16.mxu1 %v1718_v4 }
 0xba2   :  { %1567 = vmatpush3.bf16.msra.mxu1 %v1641_v44 }
 0xba3   :  { %1568 = vmatprep.subr.bf16.mxu1 %v1718_v4 }
 0xba6   :  { %1569 = vmatpush3.bf16.msra.mxu1 %v1642_v45 }
 0xba7   :  { %1570 = vmatprep.subr.bf16.mxu1 %v1718_v4 }
 0xbaa   :  { %1571 = vmatpush3.bf16.msra.mxu1 %v1643_v46 }
 0xbab   :  { %1572 = vmatprep.subr.bf16.mxu1 %v1718_v4 }
 0xbae   :  { %1573 = vmatpush3.bf16.msra.mxu1 %v1644_v47 }
 0xbaf   :  { %1574 = vmatprep.subr.bf16.mxu1 %v1718_v4 }
 0xbb2   :  { %1575 = vmatpush3.bf16.msra.mxu1 %v1645_v57 }
 0xbb3   :  { %1576 = vmatprep.subr.bf16.mxu1 %v1718_v4 }
 0xbb6   :  { %1577 = vmatpush3.bf16.msra.mxu1 %v1646_v58 }
 0xc6c   :  { %v972_v49 = vpop.f32.mrb[24].mxu1 }
 0xc6d   :  { %v973_v50 = vadd.f32 %v1364_v48, %v972_v49  ;;  %v1540_v51 = vpop.f32.mrb[25].mxu1 }
 0xc6e   :  { %v975_v52 = vpop.f32.mrb[26].mxu1 }
 0xc6f   :  { %v976_v53 = vadd.f32 %v1364_v48, %v975_v52  ;;  %v1541_v54 = vpop.f32.mrb[27].mxu1  ;;  %v979_v20 = vmax.f32 %v973_v50, 0.0 }
 0xc71   :  { %v980_v55 = vmax.f32 %v976_v53, 0.0 }
 0xc73   :  { %v981_v56 = vpack.c.bf16 %v980_v55, %v979_v20 }
 0xc75   :  { %1559 = vmatmul.mubr.bf16.vlgmr.msra.gmra.mrb[20].mxu0 %v981_v56 }
 0xc76   :  { %1598 = vmatprep.mubr.msk.bf16.mxu0 %vm1719_vm1, %v1718_v4  ;;  %1583 = vmatpush3.bf16.msra.mxu0 %v1647_v59 }
 0xc77   :  { %1584 = vmatprep.subr.bf16.mxu0 %v1718_v4 }
 0xc7a   :  { %1585 = vmatpush3.bf16.msra.mxu0 %v1648_v60 }
 0xc7b   :  { %1586 = vmatprep.subr.bf16.mxu0 %v1718_v4 }
 0xc7e   :  { %1587 = vmatpush3.bf16.msra.mxu0 %v1649_v6 }
 0xc7f   :  { %1588 = vmatprep.subr.bf16.mxu0 %v1718_v4 }
 0xc82   :  { %1589 = vmatpush3.bf16.msra.mxu0 %v1650_v7 }
 0xc83   :  { %1590 = vmatprep.subr.bf16.mxu0 %v1718_v4 }
 0xc86   :  { %1591 = vmatpush3.bf16.msra.mxu0 %v1651_v8 }
 0xc87   :  { %1592 = vmatprep.subr.bf16.mxu0 %v1718_v4 }
 0xc8a   :  { %1593 = vmatpush3.bf16.msra.mxu0 %v1652_v9 }
 0xc8b   :  { %1594 = vmatprep.subr.bf16.mxu0 %v1718_v4 }
 0xc8e   :  { %1595 = vmatpush3.bf16.msra.mxu0 %v1653_v12 }
 0xc8f   :  { %1596 = vmatprep.subr.bf16.mxu0 %v1718_v4  ;;  %v1388_v4 = vld [vmem:[%s2013_s4 + $0x9] ss:$0 sm:$0xff] }
 0xc92   :  { %1597 = vmatpush3.bf16.msra.mxu0 %v1654_v13 }
 0xd48   :  { %v1085_v62 = vpop.f32.mrb[20].mxu0 }
 0xd49   :  { %v1086_v63 = vadd.f32 %v1370_v61, %v1085_v62  ;;  %v1560_v0 = vpop.f32.mrb[21].mxu0 }
 0xd4a   :  { %v1088_v1 = vpop.f32.mrb[22].mxu0 }
 0xd4b   :  { %v1089_v2 = vadd.f32 %v1370_v61, %v1088_v1  ;;  %v1561_v3 = vpop.f32.mrb[23].mxu0  ;;  %v1092_v5 = vmax.f32 %v1086_v63, 0.0 }
 0xd4d   :  { %v1093_v10 = vmax.f32 %v1089_v2, 0.0 }
 0xd4f   :  { %v1094_v11 = vpack.c.bf16 %v1093_v10, %v1092_v5 }
 0xd51   :  { %1579 = vmatmul.mubr.bf16.vlgmr.msra.gmra.mrb[28].mxu1 %v1094_v11 }
 0xe24   :  { %v1198_v15 = vpop.f32.mrb[28].mxu1 }
 0xe25   :  { %v1199_v16 = vadd.f32 %v1379_v14, %v1198_v15  ;;  %v1580_v17 = vpop.f32.mrb[29].mxu1 }
 0xe26   :  { %v1201_v18 = vpop.f32.mrb[30].mxu1 }
 0xe27   :  { %v1202_v19 = vadd.f32 %v1379_v14, %v1201_v18  ;;  %v1581_v33 = vpop.f32.mrb[31].mxu1  ;;  %v1205_v21 = vmax.f32 %v1199_v16, 0.0 }
 0xe29   :  { %v1206_v22 = vmax.f32 %v1202_v19, 0.0 }
 0xe2b   :  { %v1207_v23 = vpack.c.bf16 %v1206_v22, %v1205_v21 }
 0xe2d   :  { %1599 = vmatmul.mubr.bf16.vlgmr.msra.gmra.mrb[24].mxu0 %v1207_v23 }
 0xf00   :  { %v1311_v34 = vpop.f32.mrb[24].mxu0 }
 0xf01   :  { %v1312_v24 = vadd.f32 %v1388_v4, %v1311_v34  ;;  %v1600_v25 = vpop.f32.mrb[25].mxu0 }
 0xf02   :  { %v1314_v26 = vpop.f32.mrb[26].mxu0 }
 0xf03   :  { %1318 = vst [vmem:[%s2014_s5] sm:$0xff] %v1312_v24  ;;  %v1315_v27 = vadd.f32 %v1388_v4, %v1314_v26  ;;  %v1601_v28 = vpop.f32.mrb[27].mxu0 }
 0xf05   :  { %1319 = vst [vmem:[%s2014_s5 + $0x8] sm:$0xff] %v1315_v27 }
 0xf06   :  { %1324 = vsyncpa [#allocation3], 1 }

</bundles_post_ra>
